<compile_context>
chip_gen: v7x
topology: tpu7x:2x2x1
jax: 0.10.0
libtpu: 0.0.40
codegen_flags: <defaults>
</compile_context>

<pallas_src>
import jax
import jax.numpy as jnp
from jax import lax
from jax.experimental import pallas as pl
from jax.experimental.pallas import tpu as pltpu


def _attn_kernel(x_ref, wk_ref, bk_ref, wq_ref, bq_ref, wv_ref, bv_ref,
                 wp_ref, bp_ref, o_ref, acc_ref):
    # grid = (B, n_head): one batch element x one head per step.
    h = pl.program_id(1)
    n_head = pl.num_programs(1)

    T = x_ref.shape[1]           # block is (1, T, C)
    hs = wk_ref.shape[2]         # (H, C, hs)

    @pl.when(h == 0)
    def _():
        acc_ref[...] = jnp.zeros_like(acc_ref)

    x = x_ref[0]                 # (T, C) bf16

    # --- per-head K / Q / V projections: bf16 MXU inputs, f32 accumulation ---
    k = jnp.dot(x, wk_ref[h], preferred_element_type=jnp.float32) + bk_ref[h]
    q = jnp.dot(x, wq_ref[h], preferred_element_type=jnp.float32) + bq_ref[h]
    v = jnp.dot(x, wv_ref[h], preferred_element_type=jnp.float32) + bv_ref[h]

    # fold the 1/head_size scale into q (equivalent to att * 1/k.size(-1))
    q = q * (1.0 / float(hs))

    # scores = q @ k^T without materializing a transpose (contract dim 1 / 1)
    att = lax.dot_general(
        q.astype(jnp.bfloat16), k.astype(jnp.bfloat16),
        dimension_numbers=(((1,), (1,)), ((), ())),
        preferred_element_type=jnp.float32)                    # (T, T) f32

    # causal mask (large finite negative -> NaN-safe, exp underflows to 0)
    row = lax.broadcasted_iota(jnp.int32, (T, T), 0)
    col = lax.broadcasted_iota(jnp.int32, (T, T), 1)
    att = jnp.where(col <= row, att, -1e30)

    # numerically-stable softmax in f32; EUP approx reciprocal for the divide
    m = jnp.max(att, axis=-1, keepdims=True)
    p = jnp.exp(att - m)
    denom = jnp.sum(p, axis=-1, keepdims=True)
    p = p * pl.reciprocal(denom, approx=True)

    # y_h = softmax @ v_h   (bf16 MXU inputs, f32 accumulation)
    y = jnp.dot(p.astype(jnp.bfloat16), v.astype(jnp.bfloat16),
                preferred_element_type=jnp.float32)            # (T, hs)

    # accumulate this head's slice of the output projection: y_h @ Wp[h]
    acc_ref[...] += jnp.dot(y.astype(jnp.bfloat16), wp_ref[h],
                            preferred_element_type=jnp.float32)  # (T, C)

    @pl.when(h == n_head - 1)
    def _():
        o_ref[0] = (acc_ref[...] + bp_ref[...]).astype(o_ref.dtype)


def _split_heads_w(w, n_head):
    """(C_in, C_out) -> (H, C_in, hs): per-head output columns."""
    c_in, c_out = w.shape
    hs = c_out // n_head
    return jnp.transpose(w.reshape(c_in, n_head, hs), (1, 0, 2))


def _split_heads_b(b, n_head):
    """(1, C) -> (H, 1, hs)."""
    c = b.shape[-1]
    hs = c // n_head
    return jnp.transpose(b.reshape(1, n_head, hs), (1, 0, 2))


def _split_heads_wp(w, n_head):
    """(C_in, C_out) -> (H, hs, C_out): per-head input rows of c_proj."""
    c_in, c_out = w.shape
    hs = c_in // n_head
    return w.reshape(n_head, hs, c_out)


def causal_self_attention_separate_kqv(x, params, n_head):
    """x: (B, T, C) f32.  params: wk,bk,wq,bq,wv,bv,wp,bp with each w* [in,out]
    (already transposed vs PyTorch) and b* [1, C]."""
    B, T, C = x.shape
    assert C % n_head == 0

    # bf16 MXU inputs (halves weight VMEM + HBM traffic); biases stay f32.
    xb = x.astype(jnp.bfloat16)
    wk = _split_heads_w(params["wk"], n_head).astype(jnp.bfloat16)
    wq = _split_heads_w(params["wq"], n_head).astype(jnp.bfloat16)
    wv = _split_heads_w(params["wv"], n_head).astype(jnp.bfloat16)
    wp = _split_heads_wp(params["wp"], n_head).astype(jnp.bfloat16)
    bk = _split_heads_b(params["bk"], n_head)
    bq = _split_heads_b(params["bq"], n_head)
    bv = _split_heads_b(params["bv"], n_head)
    bp = params["bp"]

    # Constant weights/biases: whole-operand, single-buffered VMEM residents.
    vmem_spec = pl.BlockSpec(memory_space=pltpu.MemorySpace.VMEM)
    x_spec = pl.BlockSpec((1, T, C), lambda b, h: (b, 0, 0))
    o_spec = pl.BlockSpec((1, T, C), lambda b, h: (b, 0, 0))

    return pl.pallas_call(
        _attn_kernel,
        out_shape=jax.ShapeDtypeStruct((B, T, C), x.dtype),
        grid_spec=pltpu.PrefetchScalarGridSpec(
            num_scalar_prefetch=0,
            grid=(B, n_head),
            in_specs=[
                x_spec,
                vmem_spec, vmem_spec,   # key   W, b
                vmem_spec, vmem_spec,   # query W, b
                vmem_spec, vmem_spec,   # value W, b
                vmem_spec, vmem_spec,   # c_proj W, b
            ],
            out_specs=o_spec,
            scratch_shapes=[pltpu.VMEM((T, C), jnp.float32)],  # head accumulator
        ),
        compiler_params=pltpu.CompilerParams(
            dimension_semantics=("parallel", "arbitrary"),
            vmem_limit_bytes=64 * 1024 * 1024),
    )(xb, wk, bk, wq, bq, wv, bv, wp, bp)


def _reference(x, params, n_head):
    """Pure-JAX f32 reference of the PyTorch forward (eval mode)."""
    B, T, C = x.shape
    hs = C // n_head

    def proj(w, b):
        return x @ w + b[0]

    k = proj(params["wk"], params["bk"]).reshape(B, T, n_head, hs).transpose(0, 2, 1, 3)
    q = proj(params["wq"], params["bq"]).reshape(B, T, n_head, hs).transpose(0, 2, 1, 3)
    v = proj(params["wv"], params["bv"]).reshape(B, T, n_head, hs).transpose(0, 2, 1, 3)

    att = jnp.einsum("bhtd,bhsd->bhts", q, k) * (1.0 / hs)
    mask = jnp.tril(jnp.ones((T, T), bool))
    att = jnp.where(mask[None, None], att, -jnp.inf)
    att = jax.nn.softmax(att, axis=-1)
    y = jnp.einsum("bhts,bhsd->bhtd", att, v)
    y = y.transpose(0, 2, 1, 3).reshape(B, T, C)
    return y @ params["wp"] + params["bp"][0]


def make_params(key, n_embd, encoder_var=1.0):
    """Matches _reset_parameters_mulo: weights ~ N(0, sqrt(encoder_var/n_embd)),
    biases ~ N(0, 1).  Weights stored transposed [in, out]."""
    sigma = (encoder_var / n_embd) ** 0.5
    ks = jax.random.split(key, 8)
    C = n_embd

    def w(k):
        return (sigma * jax.random.normal(k, (C, C), jnp.float32)).T

    def b(k):
        return jax.random.normal(k, (1, C), jnp.float32)

    return {
        "wk": w(ks[0]), "bk": b(ks[1]),
        "wq": w(ks[2]), "bq": b(ks[3]),
        "wv": w(ks[4]), "bv": b(ks[5]),
        "wp": w(ks[6]), "bp": b(ks[7]),
    }


if __name__ == "__main__":
    B, T, C, n_head = 2, 8, 32, 4   # block_size >= T assumed

    key = jax.random.PRNGKey(0)
    kx, kp = jax.random.split(key)
    x = jax.random.normal(kx, (B, T, C), jnp.float32)
    params = make_params(kp, C)

    out = causal_self_attention_separate_kqv(x, params, n_head)
    out = jax.block_until_ready(out)

    ref = _reference(x, params, n_head)
    assert out.shape == (B, T, C)
    # bf16 MXU inputs + approx reciprocal loosen the tolerance vs the f32 ref.
    assert jnp.allclose(out, ref, atol=1e-1, rtol=1e-1), (
        float(jnp.max(jnp.abs(out - ref))))

    print("KERNEL_OK")
</pallas_src>

<mosaic_0001>
module attributes {stable_mosaic.version = 11 : i64} {
  func.func @_attn_kernel(%arg0: i32, %arg1: i32, %arg2: memref<1x8x32xbf16, #tpu.memory_space<vmem>>, %arg3: memref<4x32x8xbf16, #tpu.memory_space<vmem>>, %arg4: memref<4x1x8xf32, #tpu.memory_space<vmem>>, %arg5: memref<4x32x8xbf16, #tpu.memory_space<vmem>>, %arg6: memref<4x1x8xf32, #tpu.memory_space<vmem>>, %arg7: memref<4x32x8xbf16, #tpu.memory_space<vmem>>, %arg8: memref<4x1x8xf32, #tpu.memory_space<vmem>>, %arg9: memref<4x8x32xbf16, #tpu.memory_space<vmem>>, %arg10: memref<1x32xf32, #tpu.memory_space<vmem>>, %arg11: memref<1x8x32xf32, #tpu.memory_space<vmem>>, %arg12: memref<8x32xf32, #tpu.memory_space<vmem>>) attributes {dimension_semantics = [#tpu.dimension_semantics<parallel>, #tpu.dimension_semantics<arbitrary>], iteration_bounds = array<i64: 2, 4>, scalar_prefetch = 0 : i64, scratch_operands = 1 : i64, tpu.core_type = #tpu.core_type<tc>, window_params = [{transform_indices = @transform_0, window_bounds = array<i64: 1, 8, 32>}, {pipeline_mode = #tpu.pipeline_mode<synchronous>, transform_indices = @transform_1, window_bounds = array<i64: 4, 32, 8>}, {pipeline_mode = #tpu.pipeline_mode<synchronous>, transform_indices = @transform_2, window_bounds = array<i64: 4, 1, 8>}, {pipeline_mode = #tpu.pipeline_mode<synchronous>, transform_indices = @transform_3, window_bounds = array<i64: 4, 32, 8>}, {pipeline_mode = #tpu.pipeline_mode<synchronous>, transform_indices = @transform_4, window_bounds = array<i64: 4, 1, 8>}, {pipeline_mode = #tpu.pipeline_mode<synchronous>, transform_indices = @transform_5, window_bounds = array<i64: 4, 32, 8>}, {pipeline_mode = #tpu.pipeline_mode<synchronous>, transform_indices = @transform_6, window_bounds = array<i64: 4, 1, 8>}, {pipeline_mode = #tpu.pipeline_mode<synchronous>, transform_indices = @transform_7, window_bounds = array<i64: 4, 8, 32>}, {pipeline_mode = #tpu.pipeline_mode<synchronous>, transform_indices = @transform_8, window_bounds = array<i64: 1, 32>}, {transform_indices = @transform_9, window_bounds = array<i64: 1, 8, 32>}]} {
    %c0_i32 = arith.constant 0 : i32
    %0 = arith.cmpi eq, %arg1, %c0_i32 : i32
    %1 = arith.extui %0 : i1 to i32
    %c0_i32_0 = arith.constant 0 : i32
    %2 = arith.cmpi ne, %1, %c0_i32_0 : i32
    scf.if %2 {
      %cst_31 = arith.constant 0.000000e+00 : f32
      %66 = vector.broadcast %cst_31 : f32 to vector<8x32xf32>
      %c0_32 = arith.constant 0 : index
      %c0_33 = arith.constant 0 : index
      %67 = vector.load %arg12[%c0_32, %c0_33] : memref<8x32xf32, #tpu.memory_space<vmem>>, vector<8x32xf32>
      tpu.vector_store %arg12[%c0_32, %c0_33], %66 {strides = array<i32>} : memref<8x32xf32, #tpu.memory_space<vmem>>, vector<8x32xf32>,
    } else {
    }
    %c0 = arith.constant 0 : index
    %c0_1 = arith.constant 0 : index
    %c0_2 = arith.constant 0 : index
    %3 = vector.load %arg2[%c0, %c0_1, %c0_2] : memref<1x8x32xbf16, #tpu.memory_space<vmem>>, vector<1x8x32xbf16>
    %4 = vector.shape_cast %3 : vector<1x8x32xbf16> to vector<8x32xbf16>
    %5 = arith.index_cast %arg1 : i32 to index
    %c0_3 = arith.constant 0 : index
    %c0_4 = arith.constant 0 : index
    %6 = vector.load %arg3[%5, %c0_3, %c0_4] : memref<4x32x8xbf16, #tpu.memory_space<vmem>>, vector<1x32x8xbf16>
    %7 = vector.shape_cast %6 : vector<1x32x8xbf16> to vector<32x8xbf16>
    %cst = arith.constant dense<0.000000e+00> : vector<8x8xf32>
    %8 = tpu.matmul %4, %7, %cst {dimension_numbers = #tpu.dot_dimension_numbers<[1], [0], [0], [1], [0, 0, 1, 1], [], []>} : vector<8x32xbf16>, vector<32x8xbf16>, vector<8x8xf32> -> vector<8x8xf32>
    %9 = arith.index_cast %arg1 : i32 to index
    %c0_5 = arith.constant 0 : index
    %c0_6 = arith.constant 0 : index
    %10 = vector.load %arg4[%9, %c0_5, %c0_6] : memref<4x1x8xf32, #tpu.memory_space<vmem>>, vector<1x1x8xf32>
    %11 = vector.shape_cast %10 : vector<1x1x8xf32> to vector<1x8xf32>
    %12 = vector.broadcast %11 : vector<1x8xf32> to vector<8x8xf32>
    %13 = arith.addf %8, %12 : vector<8x8xf32>
    %14 = arith.index_cast %arg1 : i32 to index
    %c0_7 = arith.constant 0 : index
    %c0_8 = arith.constant 0 : index
    %15 = vector.load %arg5[%14, %c0_7, %c0_8] : memref<4x32x8xbf16, #tpu.memory_space<vmem>>, vector<1x32x8xbf16>
    %16 = vector.shape_cast %15 : vector<1x32x8xbf16> to vector<32x8xbf16>
    %cst_9 = arith.constant dense<0.000000e+00> : vector<8x8xf32>
    %17 = tpu.matmul %4, %16, %cst_9 {dimension_numbers = #tpu.dot_dimension_numbers<[1], [0], [0], [1], [0, 0, 1, 1], [], []>} : vector<8x32xbf16>, vector<32x8xbf16>, vector<8x8xf32> -> vector<8x8xf32>
    %18 = arith.index_cast %arg1 : i32 to index
    %c0_10 = arith.constant 0 : index
    %c0_11 = arith.constant 0 : index
    %19 = vector.load %arg6[%18, %c0_10, %c0_11] : memref<4x1x8xf32, #tpu.memory_space<vmem>>, vector<1x1x8xf32>
    %20 = vector.shape_cast %19 : vector<1x1x8xf32> to vector<1x8xf32>
    %21 = vector.broadcast %20 : vector<1x8xf32> to vector<8x8xf32>
    %22 = arith.addf %17, %21 : vector<8x8xf32>
    %23 = arith.index_cast %arg1 : i32 to index
    %c0_12 = arith.constant 0 : index
    %c0_13 = arith.constant 0 : index
    %24 = vector.load %arg7[%23, %c0_12, %c0_13] : memref<4x32x8xbf16, #tpu.memory_space<vmem>>, vector<1x32x8xbf16>
    %25 = vector.shape_cast %24 : vector<1x32x8xbf16> to vector<32x8xbf16>
    %cst_14 = arith.constant dense<0.000000e+00> : vector<8x8xf32>
    %26 = tpu.matmul %4, %25, %cst_14 {dimension_numbers = #tpu.dot_dimension_numbers<[1], [0], [0], [1], [0, 0, 1, 1], [], []>} : vector<8x32xbf16>, vector<32x8xbf16>, vector<8x8xf32> -> vector<8x8xf32>
    %27 = arith.index_cast %arg1 : i32 to index
    %c0_15 = arith.constant 0 : index
    %c0_16 = arith.constant 0 : index
    %28 = vector.load %arg8[%27, %c0_15, %c0_16] : memref<4x1x8xf32, #tpu.memory_space<vmem>>, vector<1x1x8xf32>
    %29 = vector.shape_cast %28 : vector<1x1x8xf32> to vector<1x8xf32>
    %30 = vector.broadcast %29 : vector<1x8xf32> to vector<8x8xf32>
    %31 = arith.addf %26, %30 : vector<8x8xf32>
    %cst_17 = arith.constant 1.250000e-01 : f32
    %32 = vector.broadcast %cst_17 : f32 to vector<8x8xf32>
    %33 = arith.mulf %22, %32 : vector<8x8xf32>
    %34 = arith.truncf %33 : vector<8x8xf32> to vector<8x8xbf16>
    %35 = arith.truncf %13 : vector<8x8xf32> to vector<8x8xbf16>
    %cst_18 = arith.constant dense<0.000000e+00> : vector<8x8xf32>
    %36 = tpu.matmul %34, %35, %cst_18 {dimension_numbers = #tpu.dot_dimension_numbers<[1], [1], [0], [0], [0, 0, 1, 0], [], []>} : vector<8x8xbf16>, vector<8x8xbf16>, vector<8x8xf32> -> vector<8x8xf32>
    %37 = tpu.iota {dimensions = array<i32: 0>} : vector<8x8xi32>
    %38 = tpu.iota {dimensions = array<i32: 1>} : vector<8x8xi32>
    %39 = arith.cmpi sle, %38, %37 : vector<8x8xi32>
    %cst_19 = arith.constant -1.000000e+30 : f32
    %40 = vector.broadcast %cst_19 : f32 to vector<8x8xf32>
    %41 = arith.select %39, %36, %40 : vector<8x8xi1>, vector<8x8xf32>
    %cst_20 = arith.constant dense<0xFF800000> : vector<8xf32>
    %42 = vector.multi_reduction <maximumf>, %41, %cst_20 [1] : vector<8x8xf32> to vector<8xf32>
    %43 = vector.shape_cast %42 : vector<8xf32> to vector<8x1xf32>
    %44 = vector.broadcast %43 : vector<8x1xf32> to vector<8x8xf32>
    %45 = arith.subf %41, %44 : vector<8x8xf32>
    %46 = math.exp %45 : vector<8x8xf32>
    %cst_21 = arith.constant dense<0.000000e+00> : vector<8xf32>
    %47 = vector.multi_reduction <add>, %46, %cst_21 [1] : vector<8x8xf32> to vector<8xf32>
    %48 = vector.shape_cast %47 : vector<8xf32> to vector<8x1xf32>
    %49 = tpu.reciprocal %48 {approx = true} : vector<8x1xf32> -> vector<8x1xf32>
    %50 = vector.broadcast %49 : vector<8x1xf32> to vector<8x8xf32>
    %51 = arith.mulf %46, %50 : vector<8x8xf32>
    %52 = arith.truncf %51 : vector<8x8xf32> to vector<8x8xbf16>
    %53 = arith.truncf %31 : vector<8x8xf32> to vector<8x8xbf16>
    %cst_22 = arith.constant dense<0.000000e+00> : vector<8x8xf32>
    %54 = tpu.matmul %52, %53, %cst_22 {dimension_numbers = #tpu.dot_dimension_numbers<[1], [0], [0], [1], [0, 0, 1, 1], [], []>} : vector<8x8xbf16>, vector<8x8xbf16>, vector<8x8xf32> -> vector<8x8xf32>
    %c0_23 = arith.constant 0 : index
    %c0_24 = arith.constant 0 : index
    %55 = vector.load %arg12[%c0_23, %c0_24] : memref<8x32xf32, #tpu.memory_space<vmem>>, vector<8x32xf32>
    %56 = arith.truncf %54 : vector<8x8xf32> to vector<8x8xbf16>
    %57 = arith.index_cast %arg1 : i32 to index
    %c0_25 = arith.constant 0 : index
    %c0_26 = arith.constant 0 : index
    %58 = vector.load %arg9[%57, %c0_25, %c0_26] : memref<4x8x32xbf16, #tpu.memory_space<vmem>>, vector<1x8x32xbf16>
    %59 = vector.shape_cast %58 : vector<1x8x32xbf16> to vector<8x32xbf16>
    %cst_27 = arith.constant dense<0.000000e+00> : vector<8x32xf32>
    %60 = tpu.matmul %56, %59, %cst_27 {dimension_numbers = #tpu.dot_dimension_numbers<[1], [0], [0], [1], [0, 0, 1, 1], [], []>} : vector<8x8xbf16>, vector<8x32xbf16>, vector<8x32xf32> -> vector<8x32xf32>
    %61 = arith.addf %55, %60 : vector<8x32xf32>
    %c0_28 = arith.constant 0 : index
    %c0_29 = arith.constant 0 : index
    %62 = vector.load %arg12[%c0_28, %c0_29] : memref<8x32xf32, #tpu.memory_space<vmem>>, vector<8x32xf32>
    tpu.vector_store %arg12[%c0_28, %c0_29], %61 {strides = array<i32>} : memref<8x32xf32, #tpu.memory_space<vmem>>, vector<8x32xf32>,
    %c3_i32 = arith.constant 3 : i32
    %63 = arith.cmpi eq, %arg1, %c3_i32 : i32
    %64 = arith.extui %63 : i1 to i32
    %c0_i32_30 = arith.constant 0 : i32
    %65 = arith.cmpi ne, %64, %c0_i32_30 : i32
    scf.if %65 {
      %c0_31 = arith.constant 0 : index
      %c0_32 = arith.constant 0 : index
      %66 = vector.load %arg12[%c0_31, %c0_32] : memref<8x32xf32, #tpu.memory_space<vmem>>, vector<8x32xf32>
      %c0_33 = arith.constant 0 : index
      %c0_34 = arith.constant 0 : index
      %67 = vector.load %arg10[%c0_33, %c0_34] : memref<1x32xf32, #tpu.memory_space<vmem>>, vector<1x32xf32>
      %68 = vector.broadcast %67 : vector<1x32xf32> to vector<8x32xf32>
      %69 = arith.addf %66, %68 : vector<8x32xf32>
      %c0_35 = arith.constant 0 : index
      %c0_36 = arith.constant 0 : index
      %c0_37 = arith.constant 0 : index
      %70 = vector.load %arg11[%c0_35, %c0_36, %c0_37] : memref<1x8x32xf32, #tpu.memory_space<vmem>>, vector<1x8x32xf32>
      %71 = vector.shape_cast %70 : vector<1x8x32xf32> to vector<8x32xf32>
      %72 = vector.shape_cast %69 : vector<8x32xf32> to vector<1x8x32xf32>
      tpu.vector_store %arg11[%c0_35, %c0_36, %c0_37], %72 {strides = array<i32>} : memref<1x8x32xf32, #tpu.memory_space<vmem>>, vector<1x8x32xf32>,
    } else {
    }
    return
  }
  func.func @transform_0(%arg0: i32, %arg1: i32) -> (i32, i32, i32) {
    %c0_i32 = arith.constant 0 : i32
    %c0_i32_0 = arith.constant 0 : i32
    %c0_i32_1 = arith.constant 0 : i32
    return %arg0, %c0_i32, %c0_i32_0 : i32, i32, i32
  }
  func.func @transform_1(%arg0: i32, %arg1: i32) -> (i32, i32, i32) {
    %c0_i32 = arith.constant 0 : i32
    %c0_i32_0 = arith.constant 0 : i32
    %c0_i32_1 = arith.constant 0 : i32
    %c0_i32_2 = arith.constant 0 : i32
    return %c0_i32, %c0_i32_0, %c0_i32_1 : i32, i32, i32
  }
  func.func @transform_2(%arg0: i32, %arg1: i32) -> (i32, i32, i32) {
    %c0_i32 = arith.constant 0 : i32
    %c0_i32_0 = arith.constant 0 : i32
    %c0_i32_1 = arith.constant 0 : i32
    %c0_i32_2 = arith.constant 0 : i32
    return %c0_i32, %c0_i32_0, %c0_i32_1 : i32, i32, i32
  }
  func.func @transform_3(%arg0: i32, %arg1: i32) -> (i32, i32, i32) {
    %c0_i32 = arith.constant 0 : i32
    %c0_i32_0 = arith.constant 0 : i32
    %c0_i32_1 = arith.constant 0 : i32
    %c0_i32_2 = arith.constant 0 : i32
    return %c0_i32, %c0_i32_0, %c0_i32_1 : i32, i32, i32
  }
  func.func @transform_4(%arg0: i32, %arg1: i32) -> (i32, i32, i32) {
    %c0_i32 = arith.constant 0 : i32
    %c0_i32_0 = arith.constant 0 : i32
    %c0_i32_1 = arith.constant 0 : i32
    %c0_i32_2 = arith.constant 0 : i32
    return %c0_i32, %c0_i32_0, %c0_i32_1 : i32, i32, i32
  }
  func.func @transform_5(%arg0: i32, %arg1: i32) -> (i32, i32, i32) {
    %c0_i32 = arith.constant 0 : i32
    %c0_i32_0 = arith.constant 0 : i32
    %c0_i32_1 = arith.constant 0 : i32
    %c0_i32_2 = arith.constant 0 : i32
    return %c0_i32, %c0_i32_0, %c0_i32_1 : i32, i32, i32
  }
  func.func @transform_6(%arg0: i32, %arg1: i32) -> (i32, i32, i32) {
    %c0_i32 = arith.constant 0 : i32
    %c0_i32_0 = arith.constant 0 : i32
    %c0_i32_1 = arith.constant 0 : i32
    %c0_i32_2 = arith.constant 0 : i32
    return %c0_i32, %c0_i32_0, %c0_i32_1 : i32, i32, i32
  }
  func.func @transform_7(%arg0: i32, %arg1: i32) -> (i32, i32, i32) {
    %c0_i32 = arith.constant 0 : i32
    %c0_i32_0 = arith.constant 0 : i32
    %c0_i32_1 = arith.constant 0 : i32
    %c0_i32_2 = arith.constant 0 : i32
    return %c0_i32, %c0_i32_0, %c0_i32_1 : i32, i32, i32
  }
  func.func @transform_8(%arg0: i32, %arg1: i32) -> (i32, i32) {
    %c0_i32 = arith.constant 0 : i32
    %c0_i32_0 = arith.constant 0 : i32
    %c0_i32_1 = arith.constant 0 : i32
    return %c0_i32, %c0_i32_0 : i32, i32
  }
  func.func @transform_9(%arg0: i32, %arg1: i32) -> (i32, i32, i32) {
    %c0_i32 = arith.constant 0 : i32
    %c0_i32_0 = arith.constant 0 : i32
    %c0_i32_1 = arith.constant 0 : i32
    return %arg0, %c0_i32, %c0_i32_0 : i32, i32, i32
  }
}

</mosaic_0001>

<bundles_post_ra>
// kernel: tpu_custom_call.1
= control target key start
LH: loop header
LB: loop body
LE: loop exit
PB: predicated region body
PF: predicated region fallthrough
CT: control target
= control target key end

     0   :  { %s2224_s0 = inlined_call_operand.hbm [shape: bf16[2,8,32], index: 0, kind: input, shape index: {}]   ;;  %s2225_s1 = inlined_call_operand.hbm [shape: bf16[4,32,8], index: 1, kind: input, shape index: {}]   ;;  %s2226_s2 = inlined_call_operand.hbm [shape: f32[4,1,8], index: 2, kind: input, shape index: {}]   ;;  %s2227_s3 = inlined_call_operand.hbm [shape: bf16[4,32,8], index: 3, kind: input, shape index: {}]   ;;  %s2228_s4 = inlined_call_operand.hbm [shape: f32[4,1,8], index: 4, kind: input, shape index: {}]   ;;  %s2229_s5 = inlined_call_operand.hbm [shape: bf16[4,32,8], index: 5, kind: input, shape index: {}]   ;;  %s2230_s6 = inlined_call_operand.hbm [shape: f32[4,1,8], index: 6, kind: input, shape index: {}]   ;;  %s2231_s7 = inlined_call_operand.hbm [shape: bf16[4,8,32], index: 7, kind: input, shape index: {}]   ;;  %s2232_s8 = inlined_call_operand.hbm [shape: f32[1,32], index: 8, kind: input, shape index: {}]   ;;  %s2233_s9 = inlined_call_operand.hbm [shape: f32[2,8,32], index: 9, kind: output, shape index: {}]  }
   0x1   :  { %2243 = sst [smem:[#allocation28_spill]] %s2224_s0 }
   0x2   :  { %2244 = sst [smem:[#allocation29_spill]] %s2225_s1 }
   0x3   :  { %2245 = sst [smem:[#allocation30_spill]] %s2226_s2 }
   0x4   :  { %2246 = sst [smem:[#allocation31_spill]] %s2227_s3 }
   0x5   :  { %2247 = sst [smem:[#allocation32_spill]] %s2233_s9 }
   0x6   :  { %14 = vsyncpa [#allocation4], 0 }
   0x7   :  { %16 = vsyncpa [#allocation4 + $0x1], 0 }
   0x8   :  { %17 = vsyncpa [#allocation7], 0 }
   0x9   :  { %18 = vsyncpa [#allocation10], 0 }
   0xa   :  { %19 = vsyncpa [#allocation13], 0 }
   0xb   :  { %20 = vsyncpa [#allocation16], 0 }
   0xc   :  { %21 = vsyncpa [#allocation5], 0 }
   0xd   :  { %23 = vsyncpa [#allocation5 + $0x1], 0  ;;  %s1775_s30 = smov 0   ;;  %s1777_s10 = smov 0  }
   0xe   :  { %s1779_s11 = smov 0   ;;  %s1781_s12 = smov 0  }
   0xf   :  { %s1783_s13 = smov 0   ;;  %s1785_s14 = smov 0  }
  0x10   :  { %s1787_s15 = smov 0   ;;  %s1789_s16 = smov 0  }
  0x11 LB: > { %2248 = sst [smem:[#allocation25_spill]] %s1690_s12  ;;  %s2234_s17 = sadd.s32 4294967295, %s1706_s16   ;;  %s1706_s16 = sphi %s1789_s16, %s29_s16   ;;  %s1702_s15 = sphi %s1787_s15, %s2281_s15   ;;  %s1698_s14 = sphi %s1785_s14, %s2280_s14   ;;  %s1694_s13 = sphi %s1783_s13, %s2279_s13   ;;  %s1690_s12 = sphi %s1781_s12, %s2278_s12   ;;  %s1686_s11 = sphi %s1779_s11, %s2277_s11   ;;  %s1682_s10 = sphi %s1777_s10, %s2276_s10   ;;  %s1678_s30 = sphi %s1775_s30, %s2275_s30  }
  0x12   : > { %2249 = sst [smem:[#allocation26_spill]] %s1694_s13  ;;  %p1052_p0 = scmp.ge.s32.totalorder %s1706_s16, 1 }
  0x13   : > { %p1819_p1 = scmp.eq.s32.totalorder %s2234_s17, 0  ;;  %p266_p2 = scmp.lt.s32.totalorder %s1706_s16, 9 }
  0x14   : > { %s1708_s20 = smov [#allocation6]   ;;  %s1709_s23 = smov [#allocation9]  }
  0x15   : > { %s2250_s18 = scalar_select %p1819_p1, 1, 0 }
  0x16   : > { %p1824_p3 = pnand %p1052_p0, %p266_p2  ;;  %s278_s21 = sshll.u32 %s1708_s20, 4  ;;  %s1828_s21 = int_to_ptr.vmem [resolvable:$true] %s278_s21 }
  0x17   : > { %s304_s24 = sshll.u32 %s1709_s23, 4  ;;  %s1710_s25 = smov [#allocation12]   ;;  %s1838_s24 = int_to_ptr.vmem [resolvable:$true] %s304_s24 }
  0x18   : > { %s2251_s19 = scalar_select %p1824_p3, 1, 0 }
  0x19   : > { %p1198_p4 = pneg %p1824_p3  ;;  %s1840_s26 = sshll.u32 %s1710_s25, 4  ;;  %s331_s26 = int_to_ptr.vmem [resolvable:$true] %s1840_s26 }
  0x1a   : > { %2252 = sst [smem:[#allocation27_spill]] %s2251_s19  ;;  %s2254_s1 = sld [smem:[#allocation29_spill]] }
  0x1b   : > { %p1834_p5 = pnand %p1198_p4, %p1819_p1 }
  0x1d   : > { %p1850_p7 = pneg %p1834_p5 }
  0x20   : > { %s1338_s29 = scalar_lea.hbm %s2254_s1, 1024 }
  0x21   : > { %p1339_p6 = scmp.ne.s32.totalorder %s2254_s1, %s1338_s29  ;;  %p1345_p10 = scmp.lt.u32.totalorder %s1338_s29, %s2254_s1 }
  0x23   : > { %p1341_p8 = pnand %p1850_p7, %p1339_p6 }
  0x25   : > { %p1342_p9 = pneg %p1341_p8 }
  0x27   : > { %p1347_p11 = pnand %p1345_p10, %p1342_p9 }
  0x29   : > { %1350 = shalt.err (!%p1347_p11)
}
  0x2a   : > { %s1351_s17 = scalar_lea.vmem %s1828_s21, 1024  ;;  %p1359_p2 = scmp.lt.s32.totalorder %s1828_s21, %s1828_s21 }
  0x2b   : > { %p1352_p12 = scmp.ne.s32.totalorder %s1828_s21, %s1351_s17  ;;  %p1360_p4 = scmp.lt.s32.totalorder %s1351_s17, %s1351_s17 }
  0x2d   : > { %p1354_p13 = pnand %p1352_p12, %p1850_p7  ;;  %p1361_p6 = por %p1360_p4, %p1359_p2 }
  0x2f   : > { %p1355_p0 = pneg %p1354_p13 }
  0x31   : > { %p1362_p8 = pnand %p1361_p6, %p1355_p0 }
  0x33   : > { %1365 = shalt.err (!%p1362_p8)
}
  0x34   : > { %s1711_s27 = smov 64   ;;  %s1712_s28 = smov 4  }
  0x35   : > { %1201 = dma.hbm_to_vmem [thread:$0]  (!%p1834_p5), %s2254_s1, 1024, %s1828_s21, [#allocation7], %s1711_s27, %s1711_s27, %s1712_s28  }
  0x36   : > { %s2256_s3 = sld [smem:[#allocation31_spill]] }
  0x3c   : > { %s1366_s17 = scalar_lea.hbm %s2256_s3, 1024 }
  0x3d   : > { %p1367_p9 = scmp.ne.s32.totalorder %s2256_s3, %s1366_s17  ;;  %p1373_p12 = scmp.lt.u32.totalorder %s1366_s17, %s2256_s3 }
  0x3f   : > { %p1369_p10 = pnand %p1367_p9, %p1850_p7 }
  0x41   : > { %p1370_p11 = pneg %p1369_p10 }
  0x43   : > { %p1375_p13 = pnand %p1373_p12, %p1370_p11 }
  0x45   : > { %1378 = shalt.err (!%p1375_p13)
}
  0x46   : > { %s1379_s21 = scalar_lea.vmem %s1838_s24, 1024  ;;  %p1387_p6 = scmp.lt.s32.totalorder %s1838_s24, %s1838_s24 }
  0x47   : > { %p1380_p0 = scmp.ne.s32.totalorder %s1838_s24, %s1379_s21  ;;  %p1388_p8 = scmp.lt.s32.totalorder %s1379_s21, %s1379_s21 }
  0x49   : > { %p1382_p2 = pnand %p1380_p0, %p1850_p7  ;;  %p1389_p9 = por %p1388_p8, %p1387_p6 }
  0x4b   : > { %p1383_p4 = pneg %p1382_p2 }
  0x4d   : > { %p1390_p10 = pnand %p1389_p9, %p1383_p4 }
  0x4f   : > { %1393 = shalt.err (!%p1390_p10)
}
  0x50   : > { %1207 = dma.hbm_to_vmem [thread:$0]  (!%p1834_p5), %s2256_s3, 1024, %s1838_s24, [#allocation10], %s1711_s27, %s1711_s27, %s1712_s28  }
  0x51   : > { %s1394_s29 = scalar_lea.hbm %s2229_s5, 1024 }
  0x52   : > { %p1395_p11 = scmp.ne.s32.totalorder %s2229_s5, %s1394_s29  ;;  %p1401_p0 = scmp.lt.u32.totalorder %s1394_s29, %s2229_s5 }
  0x54   : > { %p1397_p12 = pnand %p1395_p11, %p1850_p7 }
  0x56   : > { %p1398_p13 = pneg %p1397_p12 }
  0x58   : > { %p1403_p2 = pnand %p1401_p0, %p1398_p13 }
  0x5a   : > { %1406 = shalt.err (!%p1403_p2)
}
  0x5b   : > { %s1407_s21 = scalar_lea.vmem %s331_s26, 1024  ;;  %p1415_p9 = scmp.lt.s32.totalorder %s331_s26, %s331_s26 }
  0x5c   : > { %p1408_p4 = scmp.ne.s32.totalorder %s331_s26, %s1407_s21  ;;  %p1416_p10 = scmp.lt.s32.totalorder %s1407_s21, %s1407_s21 }
  0x5e   : > { %p1410_p6 = pnand %p1408_p4, %p1850_p7  ;;  %p1417_p3 = por %p1416_p10, %p1415_p9 }
  0x60   : > { %p1411_p8 = pneg %p1410_p6 }
  0x62   : > { %p1418_p1 = pnand %p1417_p3, %p1411_p8 }
  0x64   : > { %1421 = shalt.err (!%p1418_p1)
}
  0x65   : > { %1213 = dma.hbm_to_vmem [thread:$0]  (!%p1834_p5), %s2229_s5, 1024, %s331_s26, [#allocation13], %s1711_s27, %s1711_s27, %s1712_s28  }
  0x66   : > { %s1713_s12 = smov [#allocation15]   ;;  %s1714_s19 = smov [#allocation8]  }
  0x67   : > { %s356_s13 = sshll.u32 %s1713_s12, 4  ;;  %s291_s29 = sshll.u32 %s1714_s19, 4  ;;  %s357_s13 = int_to_ptr.vmem [resolvable:$true] %s356_s13  ;;  %s292_s29 = int_to_ptr.vmem [resolvable:$true] %s291_s29 }
  0x68   : > { %s1422_s25 = scalar_lea.hbm %s2231_s7, 256 }
  0x69   : > { %p1423_p1 = scmp.ne.s32.totalorder %s2231_s7, %s1422_s25  ;;  %p1429_p12 = scmp.lt.u32.totalorder %s1422_s25, %s2231_s7 }
  0x6b   : > { %p1425_p3 = pnand %p1423_p1, %p1850_p7 }
  0x6d   : > { %p1426_p11 = pneg %p1425_p3 }
  0x6f   : > { %p1431_p13 = pnand %p1429_p12, %p1426_p11 }
  0x71   : > { %1434 = shalt.err (!%p1431_p13)
}
  0x72   : > { %s1435_s26 = scalar_lea.vmem %s357_s13, 256  ;;  %p1443_p6 = scmp.lt.s32.totalorder %s357_s13, %s357_s13 }
  0x73   : > { %p1436_p0 = scmp.ne.s32.totalorder %s357_s13, %s1435_s26  ;;  %p1444_p8 = scmp.lt.s32.totalorder %s1435_s26, %s1435_s26 }
  0x75   : > { %p1438_p2 = pnand %p1436_p0, %p1850_p7  ;;  %p1445_p9 = por %p1444_p8, %p1443_p6 }
  0x77   : > { %p1439_p4 = pneg %p1438_p2 }
  0x79   : > { %p1446_p10 = pnand %p1445_p9, %p1439_p4 }
  0x7b   : > { %1449 = shalt.err (!%p1446_p10)
}
  0x7c   : > { %1219 = dma.hbm_to_vmem [thread:$0]  (!%p1834_p5), %s2231_s7, 256, %s357_s13, [#allocation16], %s1711_s27, %s1711_s27, %s1712_s28  }
  0x7d   : > { %s2257_s2 = sld [smem:[#allocation30_spill]] }
  0x83   : > { %s1450_s20 = scalar_lea.hbm %s2257_s2, 64 }
  0x84   : > { %p1451_p1 = scmp.ne.s32.totalorder %s2257_s2, %s1450_s20  ;;  %p1457_p12 = scmp.lt.u32.totalorder %s1450_s20, %s2257_s2 }
  0x86   : > { %p1453_p3 = pnand %p1451_p1, %p1850_p7 }
  0x88   : > { %p1454_p11 = pneg %p1453_p3 }
  0x8a   : > { %p1459_p13 = pnand %p1457_p12, %p1454_p11 }
  0x8c   : > { %1462 = shalt.err (!%p1459_p13)
}
  0x8d   : > { %s1463_s24 = scalar_lea.vmem %s292_s29, 64  ;;  %p1471_p6 = scmp.lt.s32.totalorder %s292_s29, %s292_s29 }
  0x8e   : > { %p1464_p0 = scmp.ne.s32.totalorder %s292_s29, %s1463_s24  ;;  %p1472_p8 = scmp.lt.s32.totalorder %s1463_s24, %s1463_s24 }
  0x90   : > { %p1466_p2 = pnand %p1464_p0, %p1850_p7  ;;  %p1473_p9 = por %p1472_p8, %p1471_p6 }
  0x92   : > { %p1467_p4 = pneg %p1466_p2 }
  0x94   : > { %p1474_p10 = pnand %p1473_p9, %p1467_p4 }
  0x96   : > { %1477 = shalt.err (!%p1474_p10)
}
  0x97   : > { %s1715_s27 = smov 16   ;;  %s1716_s28 = smov 1  }
  0x98   : > { %1204 = dma.hbm_to_vmem [thread:$0]  (!%p1834_p5), %s2257_s2, 64, %s292_s29, [#allocation7], %s1715_s27, %s1715_s27, %s1716_s28  }
  0x99   : > { %s1717_s1 = smov [#allocation11]   ;;  %s1718_s12 = smov [#allocation14]  }
  0x9a   : > { %s317_s0 = sshll.u32 %s1717_s1, 4  ;;  %s343_s19 = sshll.u32 %s1718_s12, 4  ;;  %s318_s0 = int_to_ptr.vmem [resolvable:$true] %s317_s0  ;;  %s344_s19 = int_to_ptr.vmem [resolvable:$true] %s343_s19 }
  0x9b   : > { %s1478_s25 = scalar_lea.hbm %s2228_s4, 64 }
  0x9c   : > { %p1479_p1 = scmp.ne.s32.totalorder %s2228_s4, %s1478_s25  ;;  %p1485_p12 = scmp.lt.u32.totalorder %s1478_s25, %s2228_s4 }
  0x9e   : > { %p1481_p3 = pnand %p1479_p1, %p1850_p7 }
  0xa0   : > { %p1482_p11 = pneg %p1481_p3 }
  0xa2   : > { %p1487_p13 = pnand %p1485_p12, %p1482_p11 }
  0xa4   : > { %1490 = shalt.err (!%p1487_p13)
}
  0xa5   : > { %s1491_s29 = scalar_lea.vmem %s318_s0, 64  ;;  %p1499_p6 = scmp.lt.s32.totalorder %s318_s0, %s318_s0 }
  0xa6   : > { %p1492_p0 = scmp.ne.s32.totalorder %s318_s0, %s1491_s29  ;;  %p1500_p8 = scmp.lt.s32.totalorder %s1491_s29, %s1491_s29 }
  0xa8   : > { %p1494_p2 = pnand %p1492_p0, %p1850_p7  ;;  %p1501_p9 = por %p1500_p8, %p1499_p6 }
  0xaa   : > { %p1495_p4 = pneg %p1494_p2 }
  0xac   : > { %p1502_p10 = pnand %p1501_p9, %p1495_p4 }
  0xae   : > { %1505 = shalt.err (!%p1502_p10)
}
  0xaf   : > { %1210 = dma.hbm_to_vmem [thread:$0]  (!%p1834_p5), %s2228_s4, 64, %s318_s0, [#allocation10], %s1715_s27, %s1715_s27, %s1716_s28  }
  0xb0   : > { %s1506_s12 = scalar_lea.hbm %s2230_s6, 64 }
  0xb1   : > { %p1507_p1 = scmp.ne.s32.totalorder %s2230_s6, %s1506_s12  ;;  %p1513_p12 = scmp.lt.u32.totalorder %s1506_s12, %s2230_s6 }
  0xb3   : > { %p1509_p3 = pnand %p1507_p1, %p1850_p7 }
  0xb5   : > { %p1510_p11 = pneg %p1509_p3 }
  0xb7   : > { %p1515_p13 = pnand %p1513_p12, %p1510_p11 }
  0xb9   : > { %1518 = shalt.err (!%p1515_p13)
}
  0xba   : > { %s1519_s21 = scalar_lea.vmem %s344_s19, 64  ;;  %p1527_p6 = scmp.lt.s32.totalorder %s344_s19, %s344_s19 }
  0xbb   : > { %p1520_p0 = scmp.ne.s32.totalorder %s344_s19, %s1519_s21  ;;  %p1528_p8 = scmp.lt.s32.totalorder %s1519_s21, %s1519_s21 }
  0xbd   : > { %p1522_p2 = pnand %p1520_p0, %p1850_p7  ;;  %p1529_p9 = por %p1528_p8, %p1527_p6 }
  0xbf   : > { %p1523_p4 = pneg %p1522_p2 }
  0xc1   : > { %p1530_p10 = pnand %p1529_p9, %p1523_p4 }
  0xc3   : > { %1533 = shalt.err (!%p1530_p10)
}
  0xc4   : > { %1216 = dma.hbm_to_vmem [thread:$0]  (!%p1834_p5), %s2230_s6, 64, %s344_s19, [#allocation13], %s1715_s27, %s1715_s27, %s1716_s28  }
  0xc5   : > { %s1719_s29 = smov [#allocation17]   ;;  %s1534_s1 = scalar_lea.hbm %s2232_s8, 16 }
  0xc6   : > { %s370_s3 = sshll.u32 %s1719_s29, 4  ;;  %p1535_p1 = scmp.ne.s32.totalorder %s2232_s8, %s1534_s1  ;;  %s371_s3 = int_to_ptr.vmem [resolvable:$true] %s370_s3 }
  0xc7   : > { %p1541_p12 = scmp.lt.u32.totalorder %s1534_s1, %s2232_s8 }
  0xc8   : > { %p1537_p3 = pnand %p1535_p1, %p1850_p7 }
  0xca   : > { %p1538_p11 = pneg %p1537_p3 }
  0xcc   : > { %p1543_p13 = pnand %p1541_p12, %p1538_p11 }
  0xce   : > { %1546 = shalt.err (!%p1543_p13)
}
  0xcf   : > { %s1547_s27 = scalar_lea.vmem %s371_s3, 16  ;;  %s1554_s28 = scalar_lea.vmem %s371_s3, 32 }
  0xd0   : > { %p1548_p0 = scmp.ne.s32.totalorder %s371_s3, %s1547_s27  ;;  %p1555_p6 = scmp.lt.s32.totalorder %s371_s3, %s371_s3 }
  0xd1   : > { %p1556_p8 = scmp.lt.s32.totalorder %s1554_s28, %s1547_s27 }
  0xd2   : > { %p1550_p2 = pnand %p1548_p0, %p1850_p7 }
  0xd3   : > { %p1557_p9 = por %p1556_p8, %p1555_p6 }
  0xd4   : > { %p1551_p4 = pneg %p1550_p2 }
  0xd6   : > { %p1558_p10 = pnand %p1557_p9, %p1551_p4 }
  0xd8   : > { %1561 = shalt.err (!%p1558_p10)
}
  0xd9   : > { %1222 = dma.hbm_to_vmem [thread:$0]  (!%p1834_p5), %s2232_s8, 16, %s371_s3, [#allocation16]  }
  0xda   : > { %s1051_s9 = sadd.s32 4294967294, %s1706_s16   ;;  %s38_s21 = sadd.s32 1, %s1698_s14 }
  0xdb   : > { %p39_p7 = scmp.ge.s32.totalorder %s38_s21, 4  ;;  %s41_s22 = sadd.s32 1, %s1702_s15 }
  0xdc   : > { %s48_s0 = sadd.s32 1, %s1686_s11  ;;  %p55_p1 = scmp.ne.s32.totalorder %s1686_s11, %s1682_s10 }
  0xdd   : > { %s2283_s21 = smov (%p39_p7, %s38_s21), 0  ;;  %s2285_s22 = smov (!%p39_p7, %s41_s22), %s1702_s15 }
  0xde   : > { %p56_p3 = scmp.eq.s32.totalorder %s1706_s16, 0  ;;  %p61_p11 = scmp.ne.s32.totalorder %s1682_s10, %s1678_s30 }
  0xdf   : > { %p43_p12 = scmp.ge.s32.totalorder %s2285_s22, 2  ;;  %s2258_s24 = sadd.s32 4294967295, %s1706_s16  }
  0xe0   : > { %p253_p13 = scmp.eq.s32.totalorder %s2258_s24, 7  ;;  %p2038_p5 = por %p56_p3, %p55_p1 }
  0xe1   : > { %p2260_p0 = scmp.ne.s32.totalorder %s2250_s18, 0  ;;  %s2287_s22 = smov (%p43_p12, %s2285_s22), 0 }
  0xe2   : > { %p2050_p4 = por %p253_p13, %p55_p1  ;;  %p259_p6 = scmp.eq.s32.totalorder %s1051_s9, 7 }
  0xe3   : > { %p2044_p2 = por %p2260_p0, %p61_p11  ;;  %s45_s26 = ssub.s32 %s1702_s15, %s2287_s22 }
  0xe4   : > { %s2262_s13 = scalar_select %p2050_p4, 1, 0 }
  0xe5   : > { %p1239_p8 = scmp.lt.s32.totalorder %s1706_s16, 8  ;;  %p46_p9 = scmp.eq.s32.totalorder %s45_s26, 0 }
  0xe6   : > { %p2057_p10 = por %p259_p6, %p61_p11  ;;  %s381_s12 = sand.u32 1, %s1686_s11  }
  0xe7   : > { %s1063_s20 = sshll.u32 %s1702_s15, 6  ;;  %s1062_s25 = sshll.u32 %s381_s12, 2 }
  0xe8   : > { %s2263_s1 = scalar_select %p2057_p10, 1, 0 }
  0xe9   : > { %s2064_s23 = scalar_select %p46_p9, %s1686_s11, %s48_s0  }
  0xea   : > { %s2264_s19 = sld [smem:[#allocation28_spill]]  ;;  %s385_s9 = scalar_lea.vmem [#allocation3], %s1062_s25 }
  0xeb   : > { %s392_s24 = sshll.u32 %s385_s9, 4  ;;  %p2073_p7 = pnand %p1239_p8, %p2038_p5  ;;  %s2077_s24 = int_to_ptr.vmem [resolvable:$true] %s392_s24 }
  0xec   : > { %s382_s0 = scalar_lea.sflag [#allocation4], %s381_s12 }
  0xed   : > { %p1564_p3 = pneg %p2073_p7 }
  0xf0   : > { %s2069_s17 = scalar_lea.hbm %s2264_s19, %s1063_s20  ;;  %s1567_s29 = scalar_lea.hbm %s2264_s19, 128 }
  0xf1   : > { %s1562_s2 = scalar_lea.hbm %s2069_s17, 64  ;;  %p1568_p13 = scmp.lt.u32.totalorder %s2069_s17, %s2264_s19 }
  0xf2   : > { %p1563_p1 = scmp.ne.s32.totalorder %s2069_s17, %s1562_s2  ;;  %p1569_p5 = scmp.lt.u32.totalorder %s1567_s29, %s1562_s2 }
  0xf3   : > { %p1571_p6 = scmp.lt.u32.totalorder %s1562_s2, %s2069_s17 }
  0xf4   : > { %p1565_p11 = pnand %p1564_p3, %p1563_p1  ;;  %p1570_p0 = por %p1569_p5, %p1568_p13 }
  0xf6   : > { %p1566_p12 = pneg %p1565_p11  ;;  %p1572_p8 = por %p1571_p6, %p1570_p0 }
  0xf8   : > { %p1573_p9 = pnand %p1572_p8, %p1566_p12 }
  0xfa   : > { %1576 = shalt.err (!%p1573_p9)
}
  0xfb   : > { %s1577_s12 = scalar_lea.vmem %s2077_s24, 64  ;;  %s1720_s9 = smov [#allocation3]  }
  0xfc   : > { %p1578_p1 = scmp.ne.s32.totalorder %s2077_s24, %s1577_s12  ;;  %s1582_s20 = sshll.u32 %s1720_s9, 4  ;;  %s1583_s20 = int_to_ptr.vmem [resolvable:$false] %s1582_s20 }
  0xfd   : > { %s1584_s25 = scalar_lea.vmem %s1583_s20, 128  ;;  %p1585_p4 = scmp.lt.s32.totalorder %s2077_s24, %s1583_s20 }
  0xfe   : > { %p1580_p11 = pnand %p1578_p1, %p1564_p3  ;;  %p1586_p13 = scmp.lt.s32.totalorder %s1584_s25, %s1577_s12 }
 0x100   : > { %p1581_p10 = pneg %p1580_p11  ;;  %p1587_p5 = por %p1586_p13, %p1585_p4 }
 0x102   : > { %p1588_p0 = pnand %p1587_p5, %p1581_p10 }
 0x104   : > { %1591 = shalt.err (!%p1588_p0)
}
 0x105   : > { %1226 = dma.hbm_to_vmem [thread:$0]  (!%p2073_p7), %s2069_s17, 64, %s2077_s24, %s382_s0  }
 0x106   : > { %s2266_s2 = sld [smem:[#allocation27_spill]] }
 0x10c   : > { %p2267_p12 = scmp.ne.s32.totalorder %s2266_s2, 0 }
 0x10d   : > { %s2107_s29 = sand.u32 (!%p2267_p12), 1, %s1682_s10  }
 0x10e   : > { %401 = sbr.rel (%p2267_p12) target bundleno = 1537 (0x601), region = 56  ;;  %s1065_s27 = sshll.u32 (!%p2267_p12), %s2107_s29, 2 }
 0x10f   : > { %s404_s28 = scalar_lea.sflag (!%p2267_p12), [#allocation4], %s2107_s29  ;;  %s2111_s12 = scalar_lea.vmem (!%p2267_p12), [#allocation3], %s1065_s27 }
 0x115   : > { %1653 = dma.done.wait (%p2044_p2), %s404_s28, 64  }
 0x116   : > { %1655 = vsyncadd (%p2044_p2), %s404_s28, 4294967232  ;;  %p2268_p4 = scmp.ne.s32.totalorder %s2250_s18, 0 }
 0x118   : > { %1657 = dma.done.wait (%p2268_p4), [#allocation7], 1088  }
 0x119   : > { %1659 = vsyncadd (%p2268_p4), [#allocation7], 4294966208 }
 0x11a   : > { %1661 = dma.done.wait (%p2268_p4), [#allocation10], 1088  }
 0x11b   : > { %1663 = vsyncadd (%p2268_p4), [#allocation10], 4294966208 }
 0x11c   : > { %1665 = dma.done.wait (%p2268_p4), [#allocation13], 1088  }
 0x11d   : > { %1667 = vsyncadd (%p2268_p4), [#allocation13], 4294966208 }
 0x11e   : > { %1669 = dma.done.wait (%p2268_p4), [#allocation16], 272  }
 0x11f   : > { %1671 = vsyncadd (%p2268_p4), [#allocation16], 4294967024  ;;  %s1074_s3 = sshll.u32 %s2107_s29, 3  ;;  %s2269_s24 = sld [smem:[#allocation25_spill]] }
 0x120   : > { %s2134_s17 = scalar_lea.vmem [#allocation18], %s1074_s3 }
 0x125   : > { %p1075_p2 = scmp.ne.s32.totalorder %s2269_s24, 0 }
 0x126   : > { %vm479_vm0 = vcmask (!%p1075_p2), 261120   ;;  %v1721_v0 = vmov (!%p1075_p2), 0.0  }
 0x127   : > { %478 = sbr.rel (%p1075_p2) target bundleno = 302 (0x12e), region = 96  ;;  %480 = vst.msk [vmem:[#allocation2] sm:$0xff] (!%p1075_p2), %vm479_vm0, %v1721_v0 }
 0x12e PF: > { %s2270_s26 = sld [smem:[#allocation25_spill]]  ;;  %v1722_v1 = vmov 0.0   ;;  %vm1723_vm1 = vmmov 0   ;;  %v481_v6 = vld [vmem:[%s2111_s12] sm:$0xf]  ;;  %vm509_vm2 = vcmask 261120   ;;  %v735_v25 = vlaneseq }
 0x12f   : > { %1120 = vmatprep.subr.bf16.mxu0 %v1722_v1  ;;  %1128 = vmatprep.subr.bf16.mxu1 %v1722_v1  ;;  %vm688_vm3 = vcmask 64512   ;;  %vm757_vm5 = vcmask 1043456   ;;  %v801_v58 = vld [vmem:[#allocation2] sm:$0xff] }
 0x130   : > { %1124 = vmatprep.mubr.msk.bf16.mxu0 %vm1723_vm1, %v1722_v1  ;;  %1132 = vmatprep.mubr.msk.bf16.mxu1 %vm1723_vm1, %v1722_v1  ;;  %v736_v26 = vshrl.u32 %v735_v25, 7  ;;  %v738_v27 = vand.u32 127, %v735_v25 }
 0x132   : > { %vm739_vm4 = vcmp.le.s32.totalorder %v738_v27, %v736_v26 }
 0x134   : > { %s2138_s0 = sshll.u32 %s2270_s26, 4  ;;  %s489_s25 = scalar_lea.vmem [#allocation8], %s2270_s26 }
 0x135   : > { %s484_s18 = scalar_lea.vmem [#allocation6], %s2138_s0  ;;  %s554_s9 = scalar_lea.vmem [#allocation9], %s2138_s0  ;;  %v1078_v7 = vld [vmem:[%s489_s25] ss:$0 sm:$0xff] }
 0x136   : > { %v1328_v2 = vld [vmem:[%s484_s18] sm:$0xff]   ;;  %v1329_v3 = vld [vmem:[%s484_s18 + $0x8] sm:$0xff]   ;;  %s620_s20 = scalar_lea.vmem [#allocation12], %s2138_s0  ;;  %s559_s2 = scalar_lea.vmem [#allocation11], %s2270_s26 }
 0x137   : > { %1121 = vmatpush3.bf16.msra.mxu0 %v1328_v2  ;;  %v1330_v4 = vld [vmem:[%s554_s9] sm:$0xff]   ;;  %v1331_v5 = vld [vmem:[%s554_s9 + $0x8] sm:$0xff]   ;;  %s625_s27 = scalar_lea.vmem [#allocation14], %s2270_s26  ;;  %s1094_s28 = sshll.u32 %s2270_s26, 2 }
 0x138   : > { %1122 = vmatprep.subr.bf16.mxu0 %v1722_v1  ;;  %1129 = vmatpush3.bf16.msra.mxu1 %v1330_v4  ;;  %v1083_v9 = vld [vmem:[%s559_s2] ss:$0 sm:$0xff]  ;;  %v1333_v24 = vld [vmem:[%s620_s20 + $0x8] sm:$0xff]   ;;  %s804_s12 = scalar_lea.vmem [#allocation15], %s1094_s28  ;;  %p1096_p10 = scmp.ne.s32.totalorder %s2270_s26, 3 }
 0x139   : > { %1130 = vmatprep.subr.bf16.mxu1 %v1722_v1  ;;  %v1332_v23 = vld [vmem:[%s620_s20] sm:$0xff]  }
 0x13a   : > { %v1088_v42 = vld [vmem:[%s625_s27] ss:$0 sm:$0xff] }
 0x13b   : > { %1123 = vmatpush3.bf16.msra.mxu0 %v1329_v3  ;;  %v805_v47 = vld [vmem:[%s804_s12] sm:$0xf] }
 0x13c   : > { %1136 = vmatprep.subr.bf16.mxu0 %v1722_v1  ;;  %1131 = vmatpush3.bf16.msra.mxu1 %v1331_v5  ;;  %v810_v48 = vsel %vm757_vm5, %v805_v47, 0 }
 0x13d   : > { %1144 = vmatprep.subr.bf16.mxu1 %v1722_v1 }
 0x13e   : > { %1125 = vmatmul.mubr.msk.bf16.vlgmr.msra.gmra.mrb[0].mxu0 %vm509_vm2, %v481_v6 }
 0x13f   : > { %1140 = vmatprep.mubr.msk.bf16.mxu0 %vm1723_vm1, %v1722_v1  ;;  %1133 = vmatmul.mubr.msk.bf16.vlgmr.msra.gmra.mrb[0].mxu1 %vm509_vm2, %v481_v6 }
 0x140   : > { %1146 = vmatprep.mubr.msk.bf16.mxu1 %vm1723_vm1, %v1722_v1  ;;  %1137 = vmatpush3.bf16.msra.mxu0 %v1332_v23 }
 0x141   : > { %1138 = vmatprep.subr.bf16.mxu0 %v1722_v1 }
 0x144   : > { %1139 = vmatpush3.bf16.msra.mxu0 %v1333_v24 }
 0x145   : > { %1150 = vmatprep.subr.bf16.mxu0 %v1722_v1 }
 0x147   : > { %1141 = vmatmul.mubr.msk.bf16.vlgmr.msra.gmra.mrb[4].mxu0 %vm509_vm2, %v481_v6 }
 0x148   : > { %1152 = vmatprep.mubr.msk.bf16.mxu0 %vm1723_vm1, %v1722_v1 }
 0x211   : > { %v547_v8 = vpop.f32.mrb[0].mxu0 }
 0x212   : > { %v548_v10 = vadd.f32 %v1078_v7, %v547_v8  ;;  %v1126_v11 = vpop.f32.mrb[1].mxu0  ;;  %v613_v13 = vpop.f32.mrb[0].mxu1 }
 0x213   : > { %v550_v12 = vpop.f32.mrb[2].mxu0  ;;  %v614_v16 = vadd.f32 %v1083_v9, %v613_v13  ;;  %v1134_v17 = vpop.f32.mrb[1].mxu1 }
 0x214   : > { %v687_v14 = vpack.c.bf16 %v548_v10, %v548_v10  ;;  %v1127_v15 = vpop.f32.mrb[3].mxu0  ;;  %v616_v18 = vpop.f32.mrb[2].mxu1 }
 0x215   : > { %v685_v20 = vmul.f32 0.125, %v614_v16  ;;  %v1135_v21 = vpop.f32.mrb[3].mxu1 }
 0x216   : > { %v693_v19 = vsel %vm688_vm3, %v687_v14, 0 }
 0x217   : > { %1145 = vmatpush3.bf16.xpose.msra.mxu1 %v693_v19  ;;  %v686_v22 = vpack.c.bf16 %v685_v20, %v685_v20 }
 0x218   : > { %1156 = vmatprep.subr.bf16.mxu1 %v1722_v1 }
 0x21a   : > { %v679_v39 = vpop.f32.mrb[4].mxu0 }
 0x21b   : > { %v1142_v40 = vpop.f32.mrb[5].mxu0  ;;  %v680_v44 = vadd.f32 %v1088_v42, %v679_v39 }
 0x21c   : > { %v682_v41 = vpop.f32.mrb[6].mxu0 }
 0x21d   : > { %v1143_v43 = vpop.f32.mrb[7].mxu0  ;;  %v753_v45 = vpack.c.bf16 %v680_v44, %v680_v44 }
 0x21e   : > { %1147 = vmatmul.mubr.msk.bf16.vlgmr.msra.gmra.mrb[4].mxu1 %vm688_vm3, %v686_v22 }
 0x21f   : > { %1158 = vmatprep.mubr.msk.bf16.mxu1 %vm1723_vm1, %v1722_v1  ;;  %v759_v46 = vsel %vm757_vm5, %v753_v45, 0  ;;  %1157 = vmatpush3.bf16.msra.mxu1 %v810_v48  ;;  %v1097_v1 = vld [vmem:[#allocation17] ss:$0 sm:$0xff] (!%p1096_p10) }
 0x220   : > { %1151 = vmatpush3.bf16.msra.mxu0 %v759_v46 }
 0x2f1   : > { %v729_v28 = vpop.f32.mrb[4].mxu1 }
 0x2f2   : > { %v740_v29 = vsel %vm739_vm4, %v729_v28, -1e+30  ;;  %v1148_v30 = vpop.f32.mrb[5].mxu1 }
 0x2f3   : > { %v732_v31 = vpop.f32.mrb[6].mxu1  ;;  %v741_v32 = vsel %vm688_vm3, %v740_v29, -inf }
 0x2f4   : > { %742 = vmax.xlane.f32.xlu0 %v741_v32  ;;  %v1149_v33 = vpop.f32.mrb[7].mxu1 }
 0x381   : > { %v743_v34 = vpop.xlane.xlu0 %742 }
 0x382   : > { %v744_v35 = vsub.f32 %v740_v29, %v743_v34 }
 0x384   : > { %v745_v36 = vmul.f32 1.442695, %v744_v35 }
 0x386   : > { %1334 = vpow2.f32 %v745_v36 }
 0x390   : > { %v1335_v37 = vpop.eup %1334 }
 0x391   : > { %v747_v38 = vsel %vm688_vm3, %v1335_v37, 0.0 }
 0x392   : > { %748 = vadd.xlane.f32.xlu0 %v747_v38 }
 0x41f   : > { %v749_v49 = vpop.xlane.xlu0 %748 }
 0x420   : > { %1336 = vrcp.f32 %v749_v49 }
 0x42a   : > { %v1337_v50 = vpop.eup %1336 }
 0x42b   : > { %v751_v51 = vmul.f32 %v1337_v50, %v1335_v37 }
 0x42d   : > { %v752_v52 = vpack.c.bf16 %v751_v51, %v751_v51 }
 0x42f   : > { %1153 = vmatmul.mubr.msk.bf16.vlgmr.msra.gmra.mrb[8].mxu0 %vm688_vm3, %v752_v52 }
 0x502   : > { %v795_v53 = vpop.f32.mrb[8].mxu0 }
 0x503   : > { %v802_v54 = vpack.c.bf16 %v795_v53, %v795_v53  ;;  %v1154_v55 = vpop.f32.mrb[9].mxu0 }
 0x504   : > { %v798_v56 = vpop.f32.mrb[10].mxu0 }
 0x505   : > { %v1155_v57 = vpop.f32.mrb[11].mxu0  ;;  %1159 = vmatmul.mubr.msk.bf16.vlgmr.msra.gmra.mrb[8].mxu1 %vm688_vm3, %v802_v54 }
 0x5d5   : > { %857 = sbr.rel (%p1096_p10) target bundleno = 1510 (0x5e6), region = 100 }
 0x5d8   : > { %v846_v59 = vpop.f32.mrb[8].mxu1 }
 0x5d9   : > { %v852_v60 = vadd.f32 %v846_v59, %v801_v58  ;;  %v1160_v61 = vpop.f32.mrb[9].mxu1 }
 0x5da   : > { %v849_v62 = vpop.f32.mrb[10].mxu1 }
 0x5db   : > { %853 = vst.msk [vmem:[#allocation2] sm:$0xff] %vm509_vm2, %v852_v60  ;;  %v1161_v63 = vpop.f32.mrb[11].mxu1 }
 0x5e2   : > { %v858_v0 = vld [vmem:[#allocation2] sm:$0xff] }
 0x5e3   : > { %v866_v2 = vadd.f32 %v1097_v1, %v858_v0 }
 0x5e5   : > { %867 = vst.msk [vmem:[%s2134_s17] sm:$0xff] %vm509_vm2, %v866_v2 }
 0x5e6 PF: > { %s2271_s3 = sld [smem:[#allocation26_spill]]  ;;  %s2272_s9 = sld [smem:[#allocation32_spill]] }
 0x5e7   : > { %s882_s25 = sshll.u32 %s2134_s17, 4  ;;  %s869_s26 = scalar_lea.sflag [#allocation5], %s2107_s29  ;;  %s883_s25 = int_to_ptr.vmem [resolvable:$true] %s882_s25 }
 0x5e8   : > { %s1592_s2 = scalar_lea.vmem %s883_s25, 128  ;;  %p2273_p3 = scmp.ne.s32.totalorder %s2262_s13, 0 }
 0x5e9   : > { %p1593_p7 = scmp.ne.s32.totalorder %s883_s25, %s1592_s2  ;;  %s1724_s27 = smov [#allocation18]  }
 0x5ea   : > { %s1596_s28 = sshll.u32 %s1724_s27, 4  ;;  %s1597_s28 = int_to_ptr.vmem [resolvable:$false] %s1596_s28 }
 0x5eb   : > { %p1594_p6 = pnand %p1593_p7, %p2273_p3  ;;  %s1598_s12 = scalar_lea.vmem %s1597_s28, 256 }
 0x5ec   : > { %s1099_s24 = sshll.u32 %s2271_s3, 7  ;;  %p1599_p9 = scmp.lt.s32.totalorder %s883_s25, %s1597_s28 }
 0x5ed   : > { %s2175_s20 = scalar_lea.hbm %s2272_s9, %s1099_s24  ;;  %p1595_p8 = pneg %p1594_p6 }
 0x5ee   : > { %p1600_p1 = scmp.lt.s32.totalorder %s1598_s12, %s1592_s2 }
 0x5f0   : > { %p1601_p11 = por %p1600_p1, %p1599_p9 }
 0x5f2   : > { %p1602_p13 = pnand %p1601_p11, %p1595_p8 }
 0x5f4   : > { %1605 = shalt.err (!%p1602_p13)
}
 0x5f5   : > { %s1606_s29 = scalar_lea.hbm %s2175_s20, 128  ;;  %s1610_s24 = scalar_lea.hbm %s2272_s9, 256 }
 0x5f6   : > { %p1607_p5 = scmp.ne.s32.totalorder %s2175_s20, %s1606_s29  ;;  %p1611_p4 = scmp.lt.u32.totalorder %s2175_s20, %s2272_s9 }
 0x5f7   : > { %p1612_p2 = scmp.lt.u32.totalorder %s1610_s24, %s1606_s29  ;;  %p1614_p7 = scmp.lt.u32.totalorder %s1606_s29, %s2175_s20 }
 0x5f8   : > { %p1608_p0 = pnand %p1607_p5, %p2273_p3 }
 0x5f9   : > { %p1613_p10 = por %p1612_p2, %p1611_p4 }
 0x5fa   : > { %p1609_p12 = pneg %p1608_p0 }
 0x5fb   : > { %p1615_p6 = por %p1614_p7, %p1613_p10 }
 0x5fd   : > { %p1616_p8 = pnand %p1615_p6, %p1609_p12 }
 0x5ff   : > { %1619 = shalt.err (!%p1616_p8)
}
 0x600   : > { %1196 = dma.vmem_to_hbm [thread:$0]  (%p2273_p3), %s883_s25, 128, %s2175_s20, %s869_s26  }
 0x601 PF: > { %p1248_p9 = scmp.ge.s32.totalorder %s1706_s16, 2  ;;  %s894_s2 = sand.u32 1, %s1678_s30  }
 0x602   : > { %p2274_p1 = scmp.ne.s32.totalorder %s2263_s1, 0  ;;  %s895_s27 = scalar_lea.sflag [#allocation5], %s894_s2 }
 0x604   : > { %p1228_p11 = pnand %p1248_p9, %p2274_p1 }
 0x606   : > { %1673 = dma.done.wait (!%p1228_p11), %s895_s27, 128  }
 0x607   : > { %1675 = vsyncadd (!%p1228_p11), %s895_s27, 4294967168  ;;  %s29_s16 = sadd.s32 1, %s1706_s16   ;;  %s2275_s30 = smov %s1682_s10 }
 0x608   : > { %p26_p13 = scmp.ge.s32.totalorder %s29_s16, 10   ;;  %s2276_s10 = smov %s1686_s11 }
 0x609   : > { %s2277_s11 = smov %s2064_s23  ;;  %s2278_s12 = smov %s1698_s14 }
 0x60a   : > { %s2279_s13 = smov %s1702_s15  ;;  %s2280_s14 = smov %s2283_s21 }
 0x60b   : > { %s2281_s15 = smov %s2287_s22  ;;  %28 = sbr.rel (!%p26_p13) target bundleno = 17 (0x11), region = 148 }
 0x612   :  { %900 = vsyncpa [#allocation4], 1 }
 0x613   :  { %902 = vsyncpa [#allocation4 + $0x1], 1 }
 0x614   :  { %903 = vsyncpa [#allocation7], 1 }
 0x615   :  { %904 = vsyncpa [#allocation10], 1 }
 0x616   :  { %905 = vsyncpa [#allocation13], 1 }
 0x617   :  { %906 = vsyncpa [#allocation16], 1 }
 0x618   :  { %907 = vsyncpa [#allocation5], 1 }
 0x619   :  { %909 = vsyncpa [#allocation5 + $0x1], 1 }

</bundles_post_ra>
